<compile_context>
chip_gen: v5e
topology: v5e:2x2
jax: 0.10.0
libtpu: 0.0.40
codegen_flags: <defaults>
</compile_context>

<pallas_src>
import functools

import jax
import jax.numpy as jnp
from jax.experimental import pallas as pl
from jax.experimental.pallas import tpu as pltpu


def _drop_threshold(drop_p):
    """uint32 threshold such that P(bits >= thr) == 1 - drop_p."""
    return jnp.uint32(min(int(round(drop_p * 4294967296.0)), 0xFFFFFFFF))


def _hash_bits(shape, seed):
    """Stateless counter-based hash (splitmix/murmur-style finalizer) producing
    pseudo-uniform uint32 bits per element. Pure jnp integer ops only (VPU),
    so it lowers both through Mosaic and the CPU interpret fallback."""
    r = jax.lax.broadcasted_iota(jnp.int32, shape, 0)
    c = jax.lax.broadcasted_iota(jnp.int32, shape, 1)
    x = (r * shape[1] + c).astype(jnp.uint32)
    x = (x * jnp.uint32(0x9E3779B1)
         + seed.astype(jnp.uint32) * jnp.uint32(0x85EBCA77)
         + jnp.uint32(0x27220A95))
    x = x ^ (x >> 16)
    x = x * jnp.uint32(0x7FEB352D)
    x = x ^ (x >> 15)
    x = x * jnp.uint32(0x846CA68B)
    x = x ^ (x >> 16)
    return x


def _encoder_fused_kernel(*refs, num_layers, drop_p):
    """Fused MLP encoder: ((x@W1+b1) -> mask) -> ... -> ((.@Wn+bn) -> mask).

    refs = (seeds_smem, x, W1, b1, ..., Wn, bn, out). All operands are single
    full-array VMEM blocks; intermediates never leave VMEM/vregs.
    """
    seeds_ref = refs[0]
    x_ref = refs[1]
    o_ref = refs[-1]

    h = x_ref[...]
    thr = _drop_threshold(drop_p)
    for i in range(num_layers):
        w_ref = refs[2 + 2 * i]
        b_ref = refs[3 + 2 * i]
        # W/b already carry the 1/(1-p) dropout scale (folded once in the
        # wrapper), so dropout below is a pure select — no per-element vmul.
        h = jnp.dot(h, w_ref[...], preferred_element_type=jnp.float32) + b_ref[...]
        if drop_p > 0.0:
            bits = _hash_bits(h.shape, seeds_ref[i])
            h = jnp.where(bits >= thr, h, 0.0)
    o_ref[...] = h.astype(o_ref.dtype)


def init_encoder_params(key, input_dim, encoder_hidden, embed_dim):
    """nn.Linear-style init (uniform +-1/sqrt(fan_in)); W stored as [in, out]."""
    dims = [input_dim] + list(encoder_hidden) + [embed_dim]
    params = []
    for i in range(len(dims) - 1):
        d_in, d_out = dims[i], dims[i + 1]
        key, kw, kb = jax.random.split(key, 3)
        bound = 1.0 / (d_in ** 0.5)
        w = jax.random.uniform(kw, (d_in, d_out), jnp.float32, -bound, bound)
        b = jax.random.uniform(kb, (d_out,), jnp.float32, -bound, bound)
        params.append((w, b))
    return params


def encoder_forward(x, params, drop_p, base_seed=1234):
    """Single fused pallas_call for the whole encoder forward pass.

    NOTE: mirroring the PyTorch module, `drop_p` (== self.keep_prob) is used
    directly as the DROP probability of F.dropout, applied (training-mode)
    after every layer.
    """
    n, d_in = x.shape
    num_layers = len(params)
    drop_p = float(drop_p)

    # One-time fold of the 1/(1-p) survivor scale into the parameter constants:
    # dropout(x@W+b) == where(keep, x@(W/(1-p)) + b/(1-p), 0).
    if drop_p > 0.0:
        inv_keep = 1.0 / (1.0 - drop_p)
        params = [(w * inv_keep, b * inv_keep) for (w, b) in params]

    # Per-layer seeds, prefetched into SMEM once.
    seeds = base_seed + jnp.arange(num_layers, dtype=jnp.int32)

    zero2 = lambda i, s: (0, 0)  # every operand is one full-array block
    in_specs = [pl.BlockSpec((n, d_in), zero2)]
    call_args = [x]
    d_prev = d_in
    for w, b in params:
        d_out = w.shape[1]
        in_specs.append(pl.BlockSpec((d_prev, d_out), zero2))
        in_specs.append(pl.BlockSpec((1, d_out), zero2))
        call_args.append(w)
        call_args.append(b.reshape(1, d_out))
        d_prev = d_out

    kernel = functools.partial(
        _encoder_fused_kernel, num_layers=num_layers, drop_p=drop_p)

    return pl.pallas_call(
        kernel,
        out_shape=jax.ShapeDtypeStruct((n, d_prev), jnp.float32),
        grid_spec=pltpu.PrefetchScalarGridSpec(
            num_scalar_prefetch=1,       # seeds -> SMEM
            grid=(1,),                   # whole problem fits in VMEM in one step
            in_specs=in_specs,
            out_specs=pl.BlockSpec((n, d_prev), zero2),
        ),
    )(seeds, *call_args)


def encoder_reference(x, params, drop_p, base_seed=1234):
    """Pure-JAX reference using the identical hash mask (sanity check only)."""
    drop_p = float(drop_p)
    thr = _drop_threshold(drop_p)
    if drop_p > 0.0:
        inv_keep = 1.0 / (1.0 - drop_p)
        params = [(w * inv_keep, b * inv_keep) for (w, b) in params]
    h = x
    for i, (w, b) in enumerate(params):
        h = jnp.dot(h, w, precision=jax.lax.Precision.HIGHEST) + b
        if drop_p > 0.0:
            bits = _hash_bits(h.shape, jnp.int32(base_seed + i))
            h = jnp.where(bits >= thr, h, 0.0)
    return h


if __name__ == "__main__":
    # Small shapes consistent with the module: batch=8, input_dim=32,
    # encoder_hidden=[64, 48], embed_dim=16, keep_prob (= drop p) = 0.25.
    batch, input_dim = 8, 32
    encoder_hidden = [64, 48]
    embed_dim = 16
    keep_prob = 0.25

    key = jax.random.PRNGKey(0)
    key, kx = jax.random.split(key)
    x = jax.random.normal(kx, (batch, input_dim), jnp.float32)
    params = init_encoder_params(key, input_dim, encoder_hidden, embed_dim)

    out = jax.block_until_ready(encoder_forward(x, params, keep_prob))
    assert out.shape == (batch, embed_dim), out.shape

    ref = encoder_reference(x, params, keep_prob)
    assert bool(jnp.allclose(out, ref, rtol=2e-2, atol=2e-2)), (
        "max abs diff = %f" % float(jnp.max(jnp.abs(out - ref))))

    # TODO(synk): no eval/inference (dropout-off) path — the PyTorch forward
    # always applies F.dropout in training mode, which is what is mirrored here.
    print("KERNEL_OK")
</pallas_src>

<mosaic_0001>
module attributes {stable_mosaic.version = 11 : i64} {
  func.func @_encoder_fused_kernel(%arg0: i32, %arg1: memref<3xi32, #tpu.memory_space<smem>>, %arg2: memref<8x32xf32, #tpu.memory_space<vmem>>, %arg3: memref<32x64xf32, #tpu.memory_space<vmem>>, %arg4: memref<1x64xf32, #tpu.memory_space<vmem>>, %arg5: memref<64x48xf32, #tpu.memory_space<vmem>>, %arg6: memref<1x48xf32, #tpu.memory_space<vmem>>, %arg7: memref<48x16xf32, #tpu.memory_space<vmem>>, %arg8: memref<1x16xf32, #tpu.memory_space<vmem>>, %arg9: memref<8x16xf32, #tpu.memory_space<vmem>>) attributes {dimension_semantics = [#tpu.dimension_semantics<arbitrary>], iteration_bounds = array<i64: 1>, scalar_prefetch = 1 : i64, scratch_operands = 0 : i64, tpu.core_type = #tpu.core_type<tc>, window_params = [{pipeline_mode = #tpu.pipeline_mode<synchronous>, transform_indices = @transform_0, window_bounds = array<i64: 8, 32>}, {pipeline_mode = #tpu.pipeline_mode<synchronous>, transform_indices = @transform_1, window_bounds = array<i64: 32, 64>}, {pipeline_mode = #tpu.pipeline_mode<synchronous>, transform_indices = @transform_2, window_bounds = array<i64: 1, 64>}, {pipeline_mode = #tpu.pipeline_mode<synchronous>, transform_indices = @transform_3, window_bounds = array<i64: 64, 48>}, {pipeline_mode = #tpu.pipeline_mode<synchronous>, transform_indices = @transform_4, window_bounds = array<i64: 1, 48>}, {pipeline_mode = #tpu.pipeline_mode<synchronous>, transform_indices = @transform_5, window_bounds = array<i64: 48, 16>}, {pipeline_mode = #tpu.pipeline_mode<synchronous>, transform_indices = @transform_6, window_bounds = array<i64: 1, 16>}, {pipeline_mode = #tpu.pipeline_mode<synchronous>, transform_indices = @transform_7, window_bounds = array<i64: 8, 16>}]} {
    %c0 = arith.constant 0 : index
    %c0_0 = arith.constant 0 : index
    %0 = vector.load %arg2[%c0, %c0_0] : memref<8x32xf32, #tpu.memory_space<vmem>>, vector<8x32xf32>
    %c0_1 = arith.constant 0 : index
    %c0_2 = arith.constant 0 : index
    %1 = vector.load %arg3[%c0_1, %c0_2] : memref<32x64xf32, #tpu.memory_space<vmem>>, vector<32x64xf32>
    %cst = arith.constant dense<0.000000e+00> : vector<8x64xf32>
    %2 = tpu.matmul %0, %1, %cst {dimension_numbers = #tpu.dot_dimension_numbers<[1], [0], [0], [1], [0, 0, 1, 1], [], []>} : vector<8x32xf32>, vector<32x64xf32>, vector<8x64xf32> -> vector<8x64xf32>
    %c0_3 = arith.constant 0 : index
    %c0_4 = arith.constant 0 : index
    %3 = vector.load %arg4[%c0_3, %c0_4] : memref<1x64xf32, #tpu.memory_space<vmem>>, vector<1x64xf32>
    %4 = vector.broadcast %3 : vector<1x64xf32> to vector<8x64xf32>
    %5 = arith.addf %2, %4 : vector<8x64xf32>
    %c0_5 = arith.constant 0 : index
    %6 = memref.load %arg1[%c0_5] : memref<3xi32, #tpu.memory_space<smem>>
    %7 = tpu.iota {dimensions = array<i32: 0>} : vector<8x64xi32>
    %8 = tpu.iota {dimensions = array<i32: 1>} : vector<8x64xi32>
    %c64_i32 = arith.constant 64 : i32
    %9 = vector.broadcast %c64_i32 : i32 to vector<8x64xi32>
    %10 = arith.muli %7, %9 : vector<8x64xi32>
    %11 = arith.addi %10, %8 : vector<8x64xi32>
    %c-1640531535_i32 = arith.constant -1640531535 : i32
    %12 = vector.broadcast %c-1640531535_i32 : i32 to vector<8x64xi32>
    %13 = arith.muli %11, %12 : vector<8x64xi32>
    %c-2048144777_i32 = arith.constant -2048144777 : i32
    %14 = arith.muli %6, %c-2048144777_i32 : i32
    %15 = vector.broadcast %14 : i32 to vector<8x64xi32>
    %16 = arith.addi %13, %15 : vector<8x64xi32>
    %c656542357_i32 = arith.constant 656542357 : i32
    %17 = vector.broadcast %c656542357_i32 : i32 to vector<8x64xi32>
    %18 = arith.addi %16, %17 : vector<8x64xi32>
    %c16_i32 = arith.constant 16 : i32
    %19 = vector.broadcast %c16_i32 : i32 to vector<8x64xi32>
    %20 = arith.shrui %18, %19 : vector<8x64xi32>
    %21 = arith.xori %18, %20 : vector<8x64xi32>
    %c2146121005_i32 = arith.constant 2146121005 : i32
    %22 = vector.broadcast %c2146121005_i32 : i32 to vector<8x64xi32>
    %23 = arith.muli %21, %22 : vector<8x64xi32>
    %c15_i32 = arith.constant 15 : i32
    %24 = vector.broadcast %c15_i32 : i32 to vector<8x64xi32>
    %25 = arith.shrui %23, %24 : vector<8x64xi32>
    %26 = arith.xori %23, %25 : vector<8x64xi32>
    %c-2073254261_i32 = arith.constant -2073254261 : i32
    %27 = vector.broadcast %c-2073254261_i32 : i32 to vector<8x64xi32>
    %28 = arith.muli %26, %27 : vector<8x64xi32>
    %c16_i32_6 = arith.constant 16 : i32
    %29 = vector.broadcast %c16_i32_6 : i32 to vector<8x64xi32>
    %30 = arith.shrui %28, %29 : vector<8x64xi32>
    %31 = arith.xori %28, %30 : vector<8x64xi32>
    %c1073741824_i32 = arith.constant 1073741824 : i32
    %32 = vector.broadcast %c1073741824_i32 : i32 to vector<8x64xi32>
    %33 = arith.cmpi uge, %31, %32 : vector<8x64xi32>
    %cst_7 = arith.constant 0.000000e+00 : f32
    %34 = vector.broadcast %cst_7 : f32 to vector<8x64xf32>
    %35 = arith.select %33, %5, %34 : vector<8x64xi1>, vector<8x64xf32>
    %c0_8 = arith.constant 0 : index
    %c0_9 = arith.constant 0 : index
    %36 = vector.load %arg5[%c0_8, %c0_9] : memref<64x48xf32, #tpu.memory_space<vmem>>, vector<64x48xf32>
    %cst_10 = arith.constant dense<0.000000e+00> : vector<8x48xf32>
    %37 = tpu.matmul %35, %36, %cst_10 {dimension_numbers = #tpu.dot_dimension_numbers<[1], [0], [0], [1], [0, 0, 1, 1], [], []>} : vector<8x64xf32>, vector<64x48xf32>, vector<8x48xf32> -> vector<8x48xf32>
    %c0_11 = arith.constant 0 : index
    %c0_12 = arith.constant 0 : index
    %38 = vector.load %arg6[%c0_11, %c0_12] : memref<1x48xf32, #tpu.memory_space<vmem>>, vector<1x48xf32>
    %39 = vector.broadcast %38 : vector<1x48xf32> to vector<8x48xf32>
    %40 = arith.addf %37, %39 : vector<8x48xf32>
    %c1 = arith.constant 1 : index
    %41 = memref.load %arg1[%c1] : memref<3xi32, #tpu.memory_space<smem>>
    %42 = tpu.iota {dimensions = array<i32: 0>} : vector<8x48xi32>
    %43 = tpu.iota {dimensions = array<i32: 1>} : vector<8x48xi32>
    %c48_i32 = arith.constant 48 : i32
    %44 = vector.broadcast %c48_i32 : i32 to vector<8x48xi32>
    %45 = arith.muli %42, %44 : vector<8x48xi32>
    %46 = arith.addi %45, %43 : vector<8x48xi32>
    %c-1640531535_i32_13 = arith.constant -1640531535 : i32
    %47 = vector.broadcast %c-1640531535_i32_13 : i32 to vector<8x48xi32>
    %48 = arith.muli %46, %47 : vector<8x48xi32>
    %c-2048144777_i32_14 = arith.constant -2048144777 : i32
    %49 = arith.muli %41, %c-2048144777_i32_14 : i32
    %50 = vector.broadcast %49 : i32 to vector<8x48xi32>
    %51 = arith.addi %48, %50 : vector<8x48xi32>
    %c656542357_i32_15 = arith.constant 656542357 : i32
    %52 = vector.broadcast %c656542357_i32_15 : i32 to vector<8x48xi32>
    %53 = arith.addi %51, %52 : vector<8x48xi32>
    %c16_i32_16 = arith.constant 16 : i32
    %54 = vector.broadcast %c16_i32_16 : i32 to vector<8x48xi32>
    %55 = arith.shrui %53, %54 : vector<8x48xi32>
    %56 = arith.xori %53, %55 : vector<8x48xi32>
    %c2146121005_i32_17 = arith.constant 2146121005 : i32
    %57 = vector.broadcast %c2146121005_i32_17 : i32 to vector<8x48xi32>
    %58 = arith.muli %56, %57 : vector<8x48xi32>
    %c15_i32_18 = arith.constant 15 : i32
    %59 = vector.broadcast %c15_i32_18 : i32 to vector<8x48xi32>
    %60 = arith.shrui %58, %59 : vector<8x48xi32>
    %61 = arith.xori %58, %60 : vector<8x48xi32>
    %c-2073254261_i32_19 = arith.constant -2073254261 : i32
    %62 = vector.broadcast %c-2073254261_i32_19 : i32 to vector<8x48xi32>
    %63 = arith.muli %61, %62 : vector<8x48xi32>
    %c16_i32_20 = arith.constant 16 : i32
    %64 = vector.broadcast %c16_i32_20 : i32 to vector<8x48xi32>
    %65 = arith.shrui %63, %64 : vector<8x48xi32>
    %66 = arith.xori %63, %65 : vector<8x48xi32>
    %c1073741824_i32_21 = arith.constant 1073741824 : i32
    %67 = vector.broadcast %c1073741824_i32_21 : i32 to vector<8x48xi32>
    %68 = arith.cmpi uge, %66, %67 : vector<8x48xi32>
    %cst_22 = arith.constant 0.000000e+00 : f32
    %69 = vector.broadcast %cst_22 : f32 to vector<8x48xf32>
    %70 = arith.select %68, %40, %69 : vector<8x48xi1>, vector<8x48xf32>
    %c0_23 = arith.constant 0 : index
    %c0_24 = arith.constant 0 : index
    %71 = vector.load %arg7[%c0_23, %c0_24] : memref<48x16xf32, #tpu.memory_space<vmem>>, vector<48x16xf32>
    %cst_25 = arith.constant dense<0.000000e+00> : vector<8x16xf32>
    %72 = tpu.matmul %70, %71, %cst_25 {dimension_numbers = #tpu.dot_dimension_numbers<[1], [0], [0], [1], [0, 0, 1, 1], [], []>} : vector<8x48xf32>, vector<48x16xf32>, vector<8x16xf32> -> vector<8x16xf32>
    %c0_26 = arith.constant 0 : index
    %c0_27 = arith.constant 0 : index
    %73 = vector.load %arg8[%c0_26, %c0_27] : memref<1x16xf32, #tpu.memory_space<vmem>>, vector<1x16xf32>
    %74 = vector.broadcast %73 : vector<1x16xf32> to vector<8x16xf32>
    %75 = arith.addf %72, %74 : vector<8x16xf32>
    %c2 = arith.constant 2 : index
    %76 = memref.load %arg1[%c2] : memref<3xi32, #tpu.memory_space<smem>>
    %77 = tpu.iota {dimensions = array<i32: 0>} : vector<8x16xi32>
    %78 = tpu.iota {dimensions = array<i32: 1>} : vector<8x16xi32>
    %c16_i32_28 = arith.constant 16 : i32
    %79 = vector.broadcast %c16_i32_28 : i32 to vector<8x16xi32>
    %80 = arith.muli %77, %79 : vector<8x16xi32>
    %81 = arith.addi %80, %78 : vector<8x16xi32>
    %c-1640531535_i32_29 = arith.constant -1640531535 : i32
    %82 = vector.broadcast %c-1640531535_i32_29 : i32 to vector<8x16xi32>
    %83 = arith.muli %81, %82 : vector<8x16xi32>
    %c-2048144777_i32_30 = arith.constant -2048144777 : i32
    %84 = arith.muli %76, %c-2048144777_i32_30 : i32
    %85 = vector.broadcast %84 : i32 to vector<8x16xi32>
    %86 = arith.addi %83, %85 : vector<8x16xi32>
    %c656542357_i32_31 = arith.constant 656542357 : i32
    %87 = vector.broadcast %c656542357_i32_31 : i32 to vector<8x16xi32>
    %88 = arith.addi %86, %87 : vector<8x16xi32>
    %c16_i32_32 = arith.constant 16 : i32
    %89 = vector.broadcast %c16_i32_32 : i32 to vector<8x16xi32>
    %90 = arith.shrui %88, %89 : vector<8x16xi32>
    %91 = arith.xori %88, %90 : vector<8x16xi32>
    %c2146121005_i32_33 = arith.constant 2146121005 : i32
    %92 = vector.broadcast %c2146121005_i32_33 : i32 to vector<8x16xi32>
    %93 = arith.muli %91, %92 : vector<8x16xi32>
    %c15_i32_34 = arith.constant 15 : i32
    %94 = vector.broadcast %c15_i32_34 : i32 to vector<8x16xi32>
    %95 = arith.shrui %93, %94 : vector<8x16xi32>
    %96 = arith.xori %93, %95 : vector<8x16xi32>
    %c-2073254261_i32_35 = arith.constant -2073254261 : i32
    %97 = vector.broadcast %c-2073254261_i32_35 : i32 to vector<8x16xi32>
    %98 = arith.muli %96, %97 : vector<8x16xi32>
    %c16_i32_36 = arith.constant 16 : i32
    %99 = vector.broadcast %c16_i32_36 : i32 to vector<8x16xi32>
    %100 = arith.shrui %98, %99 : vector<8x16xi32>
    %101 = arith.xori %98, %100 : vector<8x16xi32>
    %c1073741824_i32_37 = arith.constant 1073741824 : i32
    %102 = vector.broadcast %c1073741824_i32_37 : i32 to vector<8x16xi32>
    %103 = arith.cmpi uge, %101, %102 : vector<8x16xi32>
    %cst_38 = arith.constant 0.000000e+00 : f32
    %104 = vector.broadcast %cst_38 : f32 to vector<8x16xf32>
    %105 = arith.select %103, %75, %104 : vector<8x16xi1>, vector<8x16xf32>
    %c0_39 = arith.constant 0 : index
    %c0_40 = arith.constant 0 : index
    %106 = vector.load %arg9[%c0_39, %c0_40] : memref<8x16xf32, #tpu.memory_space<vmem>>, vector<8x16xf32>
    tpu.vector_store %arg9[%c0_39, %c0_40], %105 {strides = array<i32>} : memref<8x16xf32, #tpu.memory_space<vmem>>, vector<8x16xf32>,
    return
  }
  func.func @transform_0(%arg0: i32, %arg1: memref<3xi32, #tpu.memory_space<smem>>) -> (i32, i32) {
    %c0_i32 = arith.constant 0 : i32
    %c0_i32_0 = arith.constant 0 : i32
    %c0_i32_1 = arith.constant 0 : i32
    return %c0_i32, %c0_i32_0 : i32, i32
  }
  func.func @transform_1(%arg0: i32, %arg1: memref<3xi32, #tpu.memory_space<smem>>) -> (i32, i32) {
    %c0_i32 = arith.constant 0 : i32
    %c0_i32_0 = arith.constant 0 : i32
    %c0_i32_1 = arith.constant 0 : i32
    return %c0_i32, %c0_i32_0 : i32, i32
  }
  func.func @transform_2(%arg0: i32, %arg1: memref<3xi32, #tpu.memory_space<smem>>) -> (i32, i32) {
    %c0_i32 = arith.constant 0 : i32
    %c0_i32_0 = arith.constant 0 : i32
    %c0_i32_1 = arith.constant 0 : i32
    return %c0_i32, %c0_i32_0 : i32, i32
  }
  func.func @transform_3(%arg0: i32, %arg1: memref<3xi32, #tpu.memory_space<smem>>) -> (i32, i32) {
    %c0_i32 = arith.constant 0 : i32
    %c0_i32_0 = arith.constant 0 : i32
    %c0_i32_1 = arith.constant 0 : i32
    return %c0_i32, %c0_i32_0 : i32, i32
  }
  func.func @transform_4(%arg0: i32, %arg1: memref<3xi32, #tpu.memory_space<smem>>) -> (i32, i32) {
    %c0_i32 = arith.constant 0 : i32
    %c0_i32_0 = arith.constant 0 : i32
    %c0_i32_1 = arith.constant 0 : i32
    return %c0_i32, %c0_i32_0 : i32, i32
  }
  func.func @transform_5(%arg0: i32, %arg1: memref<3xi32, #tpu.memory_space<smem>>) -> (i32, i32) {
    %c0_i32 = arith.constant 0 : i32
    %c0_i32_0 = arith.constant 0 : i32
    %c0_i32_1 = arith.constant 0 : i32
    return %c0_i32, %c0_i32_0 : i32, i32
  }
  func.func @transform_6(%arg0: i32, %arg1: memref<3xi32, #tpu.memory_space<smem>>) -> (i32, i32) {
    %c0_i32 = arith.constant 0 : i32
    %c0_i32_0 = arith.constant 0 : i32
    %c0_i32_1 = arith.constant 0 : i32
    return %c0_i32, %c0_i32_0 : i32, i32
  }
  func.func @transform_7(%arg0: i32, %arg1: memref<3xi32, #tpu.memory_space<smem>>) -> (i32, i32) {
    %c0_i32 = arith.constant 0 : i32
    %c0_i32_0 = arith.constant 0 : i32
    %c0_i32_1 = arith.constant 0 : i32
    return %c0_i32, %c0_i32_0 : i32, i32
  }
}

</mosaic_0001>

<bundles_post_ra>
// kernel: tpu_custom_call.1
= control target key start
LH: loop header
LB: loop body
LE: loop exit
PB: predicated region body
PF: predicated region fallthrough
CT: control target
= control target key end

     0   :  { %s274_s30 = smov [#allocation3]   ;;  %s403_s0 = inlined_call_operand.vmem [shape: s32[3], index: 0, kind: input, shape index: {}]   ;;  %s404_s1 = inlined_call_operand.vmem [shape: f32[8,32], index: 1, kind: input, shape index: {}]   ;;  %s405_s2 = inlined_call_operand.vmem [shape: f32[32,64], index: 2, kind: input, shape index: {}]   ;;  %s406_s3 = inlined_call_operand.vmem [shape: f32[1,64], index: 3, kind: input, shape index: {}]   ;;  %s407_s4 = inlined_call_operand.vmem [shape: f32[64,48], index: 4, kind: input, shape index: {}]   ;;  %s408_s5 = inlined_call_operand.vmem [shape: f32[1,48], index: 5, kind: input, shape index: {}]   ;;  %s409_s6 = inlined_call_operand.vmem [shape: f32[48,16], index: 6, kind: input, shape index: {}]   ;;  %s410_s7 = inlined_call_operand.vmem [shape: f32[1,16], index: 7, kind: input, shape index: {}]   ;;  %s411_s8 = inlined_call_operand.hbm [shape: f32[8,16], index: 8, kind: output, shape index: {}]  }
   0x1   :  { %s14_s29 = sshll.u32 %s403_s0, 4  ;;  %s15_s29 = int_to_ptr.vmem [resolvable:$true] %s14_s29 }
   0x2   :  { %17 = dma.vmem_to_smem %s15_s29, 16, %s274_s30, [#allocation2] }
   0x3   :  { %270 = dma.done.wait [#allocation2], 16 }
   0x4   :  { %271 = vsyncadd [#allocation2], 4294967280 }
   0x5   :  { %20 = sfence }
   0x6   :  { %v40_v0 = vld [vmem:[%s405_s2 + $0x18] sm:$0xff]  ;;  %v39_v1 = vld [vmem:[%s405_s2 + $0x10] sm:$0xff]  ;;  %v38_v3 = vld [vmem:[%s405_s2 + $0x8] sm:$0xff]  ;;  %vm45_vm0 = vcmask 261120  }
   0x7   :  { %61 = vmatpush.msra.mxu0 %v40_v0  ;;  %v100_v2 = vld [vmem:[%s407_s4 + $0x38] sm:$0xff]  ;;  %v99_v4 = vld [vmem:[%s407_s4 + $0x30] sm:$0xff]  ;;  %v98_v5 = vld [vmem:[%s407_s4 + $0x28] sm:$0xff] }
   0x8   :  { %117 = vmatpush.msra.mxu1 %v100_v2  ;;  %v37_v6 = vld [vmem:[%s405_s2] sm:$0xff] }
   0x9   :  { %62 = vmatpush.msra.mxu0 %v39_v1  ;;  %v36_v7 = vld [vmem:[%s404_s1] sm:$0xff] }
   0xa   :  { %118 = vmatpush.msra.mxu1 %v99_v4  ;;  %v97_v8 = vld [vmem:[%s407_s4 + $0x20] sm:$0xff] }
   0xb   :  { %63 = vmatpush.msra.mxu0 %v38_v3 }
   0xc   :  { %21 = vsyncpa [#allocation5], 0  ;;  %119 = vmatpush.msra.mxu1 %v98_v5  ;;  %v96_v9 = vld [vmem:[%s407_s4 + $0x18] sm:$0xff]  ;;  %v95_v10 = vld [vmem:[%s407_s4 + $0x10] sm:$0xff]  ;;  %v70_v11 = vlaneseq  ;;  %s69_s1 = sld [smem:[#allocation3]]  ;;  %vm105_vm2 = vcmask 523264  }
   0xd   :  { %64 = vmatpush.msra.mxu0 %v37_v6  ;;  %v94_v21 = vld [vmem:[%s407_s4 + $0x8] sm:$0xff]  ;;  %v93_v23 = vld [vmem:[%s407_s4] sm:$0xff]  ;;  %v152_v27 = vld [vmem:[%s409_s6 + $0x18] sm:$0xff]  ;;  %s224_s20 = sld [smem:[#allocation3 + $0x1]]  ;;  %vm159_vm4 = vcmask 392192   ;;  %s275_s28 = smov [#allocation4]  }
   0xe   :  { %221 = vmatmul.msk.f32.vlgmr.msra.gmra.mxu0 %vm45_vm0, %v36_v7  ;;  %120 = vmatpush.msra.mxu1 %v97_v8  ;;  %v357_v12 = vshrl.u32 %v70_v11, 7  ;;  %v359_v13 = vand.u32 127, %v70_v11  ;;  %v154_v25 = vld [vmem:[%s409_s6 + $0x28] sm:$0xff]  ;;  %v153_v26 = vld [vmem:[%s409_s6 + $0x20] sm:$0xff]  ;;  %v151_v29 = vld [vmem:[%s409_s6 + $0x10] sm:$0xff]  ;;  %s227_s27 = sld [smem:[#allocation3 + $0x2]] }
   0xf   :  { %173 = vmatpush.msra.mxu2 %v154_v25  ;;  %v231_v35 = vld [vmem:[%s406_s3] ss:$0 sm:$0xff]  ;;  %v150_v46 = vld [vmem:[%s409_s6 + $0x8] sm:$0xff]  ;;  %s212_s9 = sshll.u32 %s411_s8, 4  ;;  %vm203_vm6 = vcmask 130048   ;;  %s213_s9 = int_to_ptr.hbm [resolvable:$true] %s212_s9 }
  0x10   :  { %121 = vmatpush.msra.mxu1 %v96_v9  ;;  %v74_v14 = vmul.u32 64, %v357_v12  ;;  %v130_v39 = vmul.u32 48, %v357_v12  ;;  %v149_v48 = vld [vmem:[%s409_s6] sm:$0xff]  ;;  %v184_v60 = vmul.u32 16, %v357_v12 }
  0x11   :  { %174 = vmatpush.msra.mxu2 %v153_v26  ;;  %v232_v56 = vld [vmem:[%s408_s5] ss:$0 sm:$0xff] }
  0x12   :  { %122 = vmatpush.msra.mxu1 %v95_v10  ;;  %v75_v15 = vadd.s32 %v74_v14, %v359_v13  ;;  %s77_s29 = smul.u32 2246822519, %s69_s1  ;;  %v131_v40 = vadd.s32 %v130_v39, %v359_v13  ;;  %v185_v61 = vadd.s32 %v184_v60, %v359_v13  ;;  %v233_v11 = vld [vmem:[%s410_s7] ss:$0 sm:$0xff]  ;;  %s210_s1 = sshll.u32 %s275_s28, 4  ;;  %s211_s1 = int_to_ptr.vmem [resolvable:$true] %s210_s1 }
  0x13   :  { %175 = vmatpush.msra.mxu2 %v152_v27  ;;  %s133_s21 = smul.u32 2246822519, %s224_s20 }
  0x14   :  { %v76_v16 = vmul.u32 2654435761, %v75_v15  ;;  %v78_v17 = vstv %s77_s29  ;;  %123 = vmatpush.msra.mxu1 %v94_v21  ;;  %v132_v41 = vmul.u32 2654435761, %v131_v40  ;;  %s187_s6 = smul.u32 2246822519, %s227_s27 }
  0x15   :  { %176 = vmatpush.msra.mxu2 %v151_v29  ;;  %v134_v42 = vstv %s133_s21  ;;  %v186_v62 = vmul.u32 2654435761, %v185_v61 }
  0x16   :  { %v79_v18 = vadd.s32 %v78_v17, %v76_v16  ;;  %124 = vmatpush.msra.mxu1 %v93_v23  ;;  %v135_v43 = vadd.s32 %v134_v42, %v132_v41  ;;  %v188_v63 = vstv %s187_s6 }
  0x17   :  { %177 = vmatpush.msra.mxu2 %v150_v46  ;;  %v189_v0 = vadd.s32 %v188_v63, %v186_v62 }
  0x18   :  { %v80_v19 = vadd.s32 656542357, %v79_v18  ;;  %v136_v44 = vadd.s32 656542357, %v135_v43 }
  0x19   :  { %178 = vmatpush.msra.mxu2 %v149_v48  ;;  %v190_v1 = vadd.s32 656542357, %v189_v0 }
  0x1a   :  { %v81_v20 = vshrl.u32 %v80_v19, 16  ;;  %v137_v45 = vshrl.u32 %v136_v44, 16 }
  0x1b   :  { %v191_v2 = vshrl.u32 %v190_v1, 16 }
  0x1c   :  { %v82_v22 = vxor.u32 %v81_v20, %v80_v19  ;;  %v138_v47 = vxor.u32 %v137_v45, %v136_v44 }
  0x1d   :  { %v192_v3 = vxor.u32 %v191_v2, %v190_v1 }
  0x1e   :  { %v83_v24 = vmul.u32 2146121005, %v82_v22  ;;  %v139_v49 = vmul.u32 2146121005, %v138_v47 }
  0x1f   :  { %v193_v4 = vmul.u32 2146121005, %v192_v3 }
  0x20   :  { %v84_v28 = vshrl.u32 %v83_v24, 15  ;;  %v140_v50 = vshrl.u32 %v139_v49, 15 }
  0x21   :  { %v194_v5 = vshrl.u32 %v193_v4, 15 }
  0x22   :  { %v85_v30 = vxor.u32 %v84_v28, %v83_v24  ;;  %v141_v51 = vxor.u32 %v140_v50, %v139_v49 }
  0x23   :  { %v195_v6 = vxor.u32 %v194_v5, %v193_v4 }
  0x24   :  { %v86_v31 = vmul.u32 2221713035, %v85_v30  ;;  %v142_v52 = vmul.u32 2221713035, %v141_v51 }
  0x25   :  { %v196_v7 = vmul.u32 2221713035, %v195_v6 }
  0x26   :  { %v87_v32 = vshrl.u32 %v86_v31, 16  ;;  %v143_v53 = vshrl.u32 %v142_v52, 16 }
  0x27   :  { %v197_v8 = vshrl.u32 %v196_v7, 16 }
  0x28   :  { %v88_v33 = vxor.u32 %v87_v32, %v86_v31  ;;  %v144_v54 = vxor.u32 %v143_v53, %v142_v52 }
  0x29   :  { %v198_v9 = vxor.u32 %v197_v8, %v196_v7 }
  0x2a   :  { %v222_v34 = vxor.u32 2147483648, %v88_v33  ;;  %v225_v55 = vxor.u32 2147483648, %v144_v54 }
  0x2b   :  { %v228_v10 = vxor.u32 2147483648, %v198_v9 }
  0x2c   :  { %vm91_vm1 = vcmp.ge.s32.totalorder %v222_v34, 3221225472  ;;  %vm147_vm3 = vcmp.ge.s32.totalorder %v225_v55, 3221225472 }
  0x2d   :  { %vm201_vm5 = vcmp.ge.s32.totalorder %v228_v10, 3221225472 }
  0x8b   :  { %v66_v36 = vpop.f32.mrf.mxu0 }
  0x8c   :  { %v67_v37 = vadd.f32 %v231_v35, %v66_v36 }
  0x8e   :  { %v92_v38 = vsel %vm91_vm1, %v67_v37, 0.0 }
  0x8f   :  { %223 = vmatmul.msk.f32.vlgmr.msra.gmra.mxu1 %vm105_vm2, %v92_v38 }
 0x10c   :  { %v126_v57 = vpop.f32.mrf.mxu1 }
 0x10d   :  { %v127_v58 = vadd.f32 %v232_v56, %v126_v57 }
 0x10f   :  { %v148_v59 = vsel %vm147_vm3, %v127_v58, 0.0 }
 0x110   :  { %226 = vmatmul.msk.f32.vlgmr.msra.gmra.mxu2 %vm159_vm4, %v148_v59 }
 0x193   :  { %v180_v12 = vpop.f32.mrf.mxu2 }
 0x194   :  { %v181_v13 = vadd.f32 %v233_v11, %v180_v12 }
 0x196   :  { %v202_v14 = vsel %vm201_vm5, %v181_v13, 0.0 }
 0x197   :  { %204 = vst.msk [vmem:[#allocation4] sm:$0xff] %vm203_vm6, %v202_v14 }
 0x198   :  { %215 = dma.vmem_to_hbm [thread:$0]  %s211_s1, 128, %s213_s9, [#allocation5]  }
 0x199   :  { %272 = dma.done.wait [#allocation5], 128  }
 0x19a   :  { %273 = vsyncadd [#allocation5], 4294967168 }
 0x19b   :  { %220 = vsyncpa [#allocation5], 1 }

</bundles_post_ra>
